<compile_context>
chip_gen: v6e
topology: v6e:2x2x1
jax: 0.10.0
libtpu: 0.0.40
codegen_flags: <defaults>
</compile_context>

<pallas_src>
import functools

import jax
import jax.numpy as jnp
from jax.experimental import pallas as pl
from jax.experimental.pallas import tpu as pltpu


def _round_up(n, m):
    return ((n + m - 1) // m) * m


def _mlp_kernel(x_ref, w1_ref, b1_ref, w2_ref, b2_ref, w3_ref, b3_ref, o_ref):
    # fc1 + relu  (bf16 inputs, f32 accumulation)
    h = jnp.dot(x_ref[...], w1_ref[...], preferred_element_type=jnp.float32)
    h = jnp.maximum(h + b1_ref[...], 0.0)
    # fc2 + relu
    h = jnp.dot(h.astype(w2_ref.dtype), w2_ref[...],
                preferred_element_type=jnp.float32)
    h = jnp.maximum(h + b2_ref[...], 0.0)
    # fc3 (no activation)
    h = jnp.dot(h.astype(w3_ref.dtype), w3_ref[...],
                preferred_element_type=jnp.float32)
    o_ref[...] = (h + b3_ref[...]).astype(o_ref.dtype)


@functools.partial(jax.jit, static_argnames=("tb",))
def license_plate_classifier(x, params, *, tb=1024):
    """x: (B, input_size) float32.  params: dict of (w1,b1,w2,b2,w3,b3).

    Weights are stored (in_features, out_features); the kernel computes
    x @ W + b, equivalent to PyTorch's x @ W.T + b.
    """
    w1, b1, w2, b2, w3, b3 = (
        params["w1"], params["b1"], params["w2"],
        params["b2"], params["w3"], params["b3"],
    )
    B, in_size = x.shape
    hidden = w1.shape[1]
    out_size = w3.shape[1]

    # Lane-dense padded feature dims.
    in_p = _round_up(in_size, 128)     # 380 -> 384
    hid_p = _round_up(hidden, 128)     # 25  -> 128
    out_p = _round_up(out_size, 128)   # 3   -> 128

    # Batch tile: multiple of 256, capped at `tb`; pad batch up to it.
    tb_eff = min(_round_up(tb, 256), _round_up(max(B, 1), 256))
    b_p = _round_up(B, tb_eff)

    bf16, f32 = jnp.bfloat16, jnp.float32

    # Zero-pad + cast operands (padding is exact: zero rows/cols contribute 0).
    xp = jnp.zeros((b_p, in_p), bf16).at[:B, :in_size].set(x.astype(bf16))
    w1p = jnp.zeros((in_p, hid_p), bf16).at[:in_size, :hidden].set(w1.astype(bf16))
    b1p = jnp.zeros((1, hid_p), f32).at[:, :hidden].set(b1.astype(f32))
    w2p = jnp.zeros((hid_p, hid_p), bf16).at[:hidden, :hidden].set(w2.astype(bf16))
    b2p = jnp.zeros((1, hid_p), f32).at[:, :hidden].set(b2.astype(f32))
    w3p = jnp.zeros((hid_p, out_p), bf16).at[:hidden, :out_size].set(w3.astype(bf16))
    b3p = jnp.zeros((1, out_p), f32).at[:, :out_size].set(b3.astype(f32))

    grid = (b_p // tb_eff,)

    out_padded = pl.pallas_call(
        _mlp_kernel,
        out_shape=jax.ShapeDtypeStruct((b_p, out_p), f32),
        grid=grid,
        in_specs=[
            # batch-tiled activation stream
            pl.BlockSpec((tb_eff, in_p), lambda i: (i, 0)),
            # weights / biases: constant index_map -> VMEM-resident, no re-DMA
            pl.BlockSpec((in_p, hid_p), lambda i: (0, 0)),
            pl.BlockSpec((1, hid_p), lambda i: (0, 0)),
            pl.BlockSpec((hid_p, hid_p), lambda i: (0, 0)),
            pl.BlockSpec((1, hid_p), lambda i: (0, 0)),
            pl.BlockSpec((hid_p, out_p), lambda i: (0, 0)),
            pl.BlockSpec((1, out_p), lambda i: (0, 0)),
        ],
        out_specs=pl.BlockSpec((tb_eff, out_p), lambda i: (i, 0)),
        compiler_params=pltpu.CompilerParams(
            dimension_semantics=("parallel",),
        ),
    )(xp, w1p, b1p, w2p, b2p, w3p, b3p)

    return out_padded[:B, :out_size]


def init_params(key, input_size=380, hidden_size=25, output_size=3):
    """Deterministic init mimicking nn.Linear's U(-1/sqrt(fan_in), 1/sqrt(fan_in))."""
    keys = jax.random.split(key, 6)

    def linear(kw, kb, fan_in, fan_out):
        bound = 1.0 / jnp.sqrt(jnp.float32(fan_in))
        # stored already transposed: (in, out)
        w = jax.random.uniform(kw, (fan_in, fan_out), jnp.float32, -bound, bound)
        b = jax.random.uniform(kb, (1, fan_out), jnp.float32, -bound, bound)
        return w, b

    w1, b1 = linear(keys[0], keys[1], input_size, hidden_size)
    w2, b2 = linear(keys[2], keys[3], hidden_size, hidden_size)
    w3, b3 = linear(keys[4], keys[5], hidden_size, output_size)
    return {"w1": w1, "b1": b1, "w2": w2, "b2": b2, "w3": w3, "b3": b3}


def reference_kernel_math(x, p):
    """Mirrors the kernel's numerics: bf16 inputs, f32 accumulation."""
    bf16, f32 = jnp.bfloat16, jnp.float32
    h = jnp.dot(x.astype(bf16), p["w1"].astype(bf16),
                preferred_element_type=f32) + p["b1"]
    h = jnp.maximum(h, 0.0)
    h = jnp.dot(h.astype(bf16), p["w2"].astype(bf16),
                preferred_element_type=f32) + p["b2"]
    h = jnp.maximum(h, 0.0)
    h = jnp.dot(h.astype(bf16), p["w3"].astype(bf16),
                preferred_element_type=f32) + p["b3"]
    return h


def reference_f32(x, p):
    """Full-precision reference (matches the original PyTorch module)."""
    h = jnp.maximum(x @ p["w1"] + p["b1"], 0.0)
    h = jnp.maximum(h @ p["w2"] + p["b2"], 0.0)
    return h @ p["w3"] + p["b3"]


if __name__ == "__main__":
    key = jax.random.PRNGKey(0)
    k_params, k_x = jax.random.split(key)

    input_size, hidden_size, output_size = 380, 25, 3
    batch = 2

    params = init_params(k_params, input_size, hidden_size, output_size)
    x = jax.random.normal(k_x, (batch, input_size), jnp.float32)

    out = license_plate_classifier(x, params)
    out = jax.block_until_ready(out)

    assert out.shape == (batch, output_size)

    # Exact-math check against a jnp mirror of the kernel's bf16/f32 pipeline.
    ref_bf16 = reference_kernel_math(x, params)
    assert jnp.allclose(out, ref_bf16, atol=1e-3, rtol=1e-3), \
        "mismatch vs bf16/f32 reference"

    # Loose sanity check against the full-f32 PyTorch-equivalent forward.
    ref_f32 = reference_f32(x, params)
    assert jnp.allclose(out, ref_f32, atol=5e-2, rtol=5e-2), \
        "mismatch vs f32 reference"

    print("KERNEL_OK")
</pallas_src>

<mosaic_0001>
module attributes {stable_mosaic.version = 11 : i64} {
  func.func @_mlp_kernel(%arg0: i32, %arg1: memref<256x384xbf16, #tpu.memory_space<vmem>>, %arg2: memref<384x128xbf16, #tpu.memory_space<vmem>>, %arg3: memref<1x128xf32, #tpu.memory_space<vmem>>, %arg4: memref<128x128xbf16, #tpu.memory_space<vmem>>, %arg5: memref<1x128xf32, #tpu.memory_space<vmem>>, %arg6: memref<128x128xbf16, #tpu.memory_space<vmem>>, %arg7: memref<1x128xf32, #tpu.memory_space<vmem>>, %arg8: memref<256x128xf32, #tpu.memory_space<vmem>>) attributes {dimension_semantics = [#tpu.dimension_semantics<parallel>], iteration_bounds = array<i64: 1>, scalar_prefetch = 0 : i64, scratch_operands = 0 : i64, tpu.core_type = #tpu.core_type<tc>, window_params = [{transform_indices = @transform_0, window_bounds = array<i64: 256, 384>}, {pipeline_mode = #tpu.pipeline_mode<synchronous>, transform_indices = @transform_1, window_bounds = array<i64: 384, 128>}, {pipeline_mode = #tpu.pipeline_mode<synchronous>, transform_indices = @transform_2, window_bounds = array<i64: 1, 128>}, {pipeline_mode = #tpu.pipeline_mode<synchronous>, transform_indices = @transform_3, window_bounds = array<i64: 128, 128>}, {pipeline_mode = #tpu.pipeline_mode<synchronous>, transform_indices = @transform_4, window_bounds = array<i64: 1, 128>}, {pipeline_mode = #tpu.pipeline_mode<synchronous>, transform_indices = @transform_5, window_bounds = array<i64: 128, 128>}, {pipeline_mode = #tpu.pipeline_mode<synchronous>, transform_indices = @transform_6, window_bounds = array<i64: 1, 128>}, {transform_indices = @transform_7, window_bounds = array<i64: 256, 128>}]} {
    %c0 = arith.constant 0 : index
    %c0_0 = arith.constant 0 : index
    %0 = vector.load %arg1[%c0, %c0_0] : memref<256x384xbf16, #tpu.memory_space<vmem>>, vector<256x384xbf16>
    %c0_1 = arith.constant 0 : index
    %c0_2 = arith.constant 0 : index
    %1 = vector.load %arg2[%c0_1, %c0_2] : memref<384x128xbf16, #tpu.memory_space<vmem>>, vector<384x128xbf16>
    %cst = arith.constant dense<0.000000e+00> : vector<256x128xf32>
    %2 = tpu.matmul %0, %1, %cst {dimension_numbers = #tpu.dot_dimension_numbers<[1], [0], [0], [1], [0, 0, 1, 1], [], []>} : vector<256x384xbf16>, vector<384x128xbf16>, vector<256x128xf32> -> vector<256x128xf32>
    %c0_3 = arith.constant 0 : index
    %c0_4 = arith.constant 0 : index
    %3 = vector.load %arg3[%c0_3, %c0_4] : memref<1x128xf32, #tpu.memory_space<vmem>>, vector<1x128xf32>
    %4 = vector.broadcast %3 : vector<1x128xf32> to vector<256x128xf32>
    %5 = arith.addf %2, %4 : vector<256x128xf32>
    %cst_5 = arith.constant 0.000000e+00 : f32
    %6 = vector.broadcast %cst_5 : f32 to vector<256x128xf32>
    %7 = arith.maximumf %5, %6 : vector<256x128xf32>
    %8 = arith.truncf %7 : vector<256x128xf32> to vector<256x128xbf16>
    %c0_6 = arith.constant 0 : index
    %c0_7 = arith.constant 0 : index
    %9 = vector.load %arg4[%c0_6, %c0_7] : memref<128x128xbf16, #tpu.memory_space<vmem>>, vector<128x128xbf16>
    %cst_8 = arith.constant dense<0.000000e+00> : vector<256x128xf32>
    %10 = tpu.matmul %8, %9, %cst_8 {dimension_numbers = #tpu.dot_dimension_numbers<[1], [0], [0], [1], [0, 0, 1, 1], [], []>} : vector<256x128xbf16>, vector<128x128xbf16>, vector<256x128xf32> -> vector<256x128xf32>
    %c0_9 = arith.constant 0 : index
    %c0_10 = arith.constant 0 : index
    %11 = vector.load %arg5[%c0_9, %c0_10] : memref<1x128xf32, #tpu.memory_space<vmem>>, vector<1x128xf32>
    %12 = vector.broadcast %11 : vector<1x128xf32> to vector<256x128xf32>
    %13 = arith.addf %10, %12 : vector<256x128xf32>
    %cst_11 = arith.constant 0.000000e+00 : f32
    %14 = vector.broadcast %cst_11 : f32 to vector<256x128xf32>
    %15 = arith.maximumf %13, %14 : vector<256x128xf32>
    %16 = arith.truncf %15 : vector<256x128xf32> to vector<256x128xbf16>
    %c0_12 = arith.constant 0 : index
    %c0_13 = arith.constant 0 : index
    %17 = vector.load %arg6[%c0_12, %c0_13] : memref<128x128xbf16, #tpu.memory_space<vmem>>, vector<128x128xbf16>
    %cst_14 = arith.constant dense<0.000000e+00> : vector<256x128xf32>
    %18 = tpu.matmul %16, %17, %cst_14 {dimension_numbers = #tpu.dot_dimension_numbers<[1], [0], [0], [1], [0, 0, 1, 1], [], []>} : vector<256x128xbf16>, vector<128x128xbf16>, vector<256x128xf32> -> vector<256x128xf32>
    %c0_15 = arith.constant 0 : index
    %c0_16 = arith.constant 0 : index
    %19 = vector.load %arg7[%c0_15, %c0_16] : memref<1x128xf32, #tpu.memory_space<vmem>>, vector<1x128xf32>
    %20 = vector.broadcast %19 : vector<1x128xf32> to vector<256x128xf32>
    %21 = arith.addf %18, %20 : vector<256x128xf32>
    %c0_17 = arith.constant 0 : index
    %c0_18 = arith.constant 0 : index
    %22 = vector.load %arg8[%c0_17, %c0_18] : memref<256x128xf32, #tpu.memory_space<vmem>>, vector<256x128xf32>
    tpu.vector_store %arg8[%c0_17, %c0_18], %21 {strides = array<i32>} : memref<256x128xf32, #tpu.memory_space<vmem>>, vector<256x128xf32>,
    return
  }
  func.func @transform_0(%arg0: i32) -> (i32, i32) {
    %c0_i32 = arith.constant 0 : i32
    %c0_i32_0 = arith.constant 0 : i32
    return %arg0, %c0_i32 : i32, i32
  }
  func.func @transform_1(%arg0: i32) -> (i32, i32) {
    %c0_i32 = arith.constant 0 : i32
    %c0_i32_0 = arith.constant 0 : i32
    %c0_i32_1 = arith.constant 0 : i32
    return %c0_i32, %c0_i32_0 : i32, i32
  }
  func.func @transform_2(%arg0: i32) -> (i32, i32) {
    %c0_i32 = arith.constant 0 : i32
    %c0_i32_0 = arith.constant 0 : i32
    %c0_i32_1 = arith.constant 0 : i32
    return %c0_i32, %c0_i32_0 : i32, i32
  }
  func.func @transform_3(%arg0: i32) -> (i32, i32) {
    %c0_i32 = arith.constant 0 : i32
    %c0_i32_0 = arith.constant 0 : i32
    %c0_i32_1 = arith.constant 0 : i32
    return %c0_i32, %c0_i32_0 : i32, i32
  }
  func.func @transform_4(%arg0: i32) -> (i32, i32) {
    %c0_i32 = arith.constant 0 : i32
    %c0_i32_0 = arith.constant 0 : i32
    %c0_i32_1 = arith.constant 0 : i32
    return %c0_i32, %c0_i32_0 : i32, i32
  }
  func.func @transform_5(%arg0: i32) -> (i32, i32) {
    %c0_i32 = arith.constant 0 : i32
    %c0_i32_0 = arith.constant 0 : i32
    %c0_i32_1 = arith.constant 0 : i32
    return %c0_i32, %c0_i32_0 : i32, i32
  }
  func.func @transform_6(%arg0: i32) -> (i32, i32) {
    %c0_i32 = arith.constant 0 : i32
    %c0_i32_0 = arith.constant 0 : i32
    %c0_i32_1 = arith.constant 0 : i32
    return %c0_i32, %c0_i32_0 : i32, i32
  }
  func.func @transform_7(%arg0: i32) -> (i32, i32) {
    %c0_i32 = arith.constant 0 : i32
    %c0_i32_0 = arith.constant 0 : i32
    return %arg0, %c0_i32 : i32, i32
  }
}

</mosaic_0001>

<bundles_post_ra>
// kernel: license_plate_classifier.1
= control target key start
LH: loop header
LB: loop body
LE: loop exit
PB: predicated region body
PF: predicated region fallthrough
CT: control target
= control target key end

     0   :  { %s2544_s1 = inlined_call_operand.vmem [shape: bf16[384,128], index: 1, kind: input, shape index: {}]   ;;  %s2545_s0 = inlined_call_operand.vmem [shape: bf16[256,384], index: 0, kind: input, shape index: {}]   ;;  %s2546_s3 = inlined_call_operand.vmem [shape: bf16[128,128], index: 3, kind: input, shape index: {}]   ;;  %s2547_s5 = inlined_call_operand.vmem [shape: bf16[128,128], index: 5, kind: input, shape index: {}]   ;;  %s2548_s2 = inlined_call_operand.vmem [shape: f32[1,128], index: 2, kind: input, shape index: {}]   ;;  %s2549_s4 = inlined_call_operand.vmem [shape: f32[1,128], index: 4, kind: input, shape index: {}]   ;;  %s2550_s6 = inlined_call_operand.vmem [shape: f32[1,128], index: 6, kind: input, shape index: {}]   ;;  %s2551_s7 = inlined_call_operand.vmem [shape: f32[256,128], index: 7, kind: output, shape index: {}]  }
   0x1   :  { %v1899_v0 = vld [vmem:[%s2544_s1 + $0x78] sm:$0xff]   ;;  %v1901_v2 = vld [vmem:[%s2544_s1 + $0x70] sm:$0xff]   ;;  %v1903_v4 = vld [vmem:[%s2544_s1 + $0x68] sm:$0xff]  }
   0x2   :  { %v1900_v1 = vld [vmem:[%s2544_s1 + $0x38] sm:$0xff]   ;;  %1555 = vmatprep.subr.bf16.mxu0 %v1899_v0  ;;  %1883 = vmatprep.subr.bf16.mxu1 %v1899_v0  ;;  %v1902_v3 = vld [vmem:[%s2544_s1 + $0x30] sm:$0xff]   ;;  %v1904_v5 = vld [vmem:[%s2544_s1 + $0x28] sm:$0xff]  }
   0x3   :  { %1556 = vmatpush3.bf16.msra.mxu0 %v1900_v1  ;;  %1891 = vmatpush3.bf16.msra.mxu1 %v1900_v1  ;;  %v1905_v6 = vld [vmem:[%s2544_s1 + $0x60] sm:$0xff]   ;;  %v1907_v8 = vld [vmem:[%s2544_s1 + $0x58] sm:$0xff]   ;;  %v1909_v10 = vld [vmem:[%s2544_s1 + $0x50] sm:$0xff]  }
   0x4   :  { %1557 = vmatprep.subr.bf16.mxu0 %v1901_v2  ;;  %1884 = vmatprep.subr.bf16.mxu1 %v1901_v2  ;;  %v1906_v7 = vld [vmem:[%s2544_s1 + $0x20] sm:$0xff]   ;;  %v1908_v9 = vld [vmem:[%s2544_s1 + $0x18] sm:$0xff]   ;;  %v1910_v13 = vld [vmem:[%s2544_s1 + $0x10] sm:$0xff]  }
   0x5   :  { %v1917_v11 = vld [vmem:[%s2545_s0 + $0x4] ss:$12 sps:$4 sm:$0xff]   ;;  %v1911_v14 = vld [vmem:[%s2544_s1 + $0x48] sm:$0xff]   ;;  %v1921_v18 = vld [vmem:[%s2544_s1 + $0xb8] sm:$0xff]  }
   0x6   :  { %v1920_v12 = vld [vmem:[%s2545_s0 + $0x124] ss:$12 sps:$4 sm:$0xff]   ;;  %578 = vmatprep.mubr.bf16.mxu0 %v1917_v11  ;;  %v1912_v15 = vld [vmem:[%s2544_s1 + $0x8] sm:$0xff]   ;;  %v1931_v28 = vld [vmem:[%s2545_s0 + $0x34] ss:$12 sps:$4 sm:$0xff]  }
   0x7   :  { %1558 = vmatpush3.bf16.msra.mxu0 %v1902_v3  ;;  %1892 = vmatpush3.bf16.msra.mxu1 %v1902_v3  ;;  %v1913_v16 = vld [vmem:[%s2544_s1 + $0x40] sm:$0xff]   ;;  %v1923_v21 = vld [vmem:[%s2545_s0 + $0x1c] ss:$12 sps:$4 sm:$0xff]   ;;  %v1922_v22 = vld [vmem:[%s2544_s1 + $0xb0] sm:$0xff]  }
   0x8   :  { %1559 = vmatprep.subr.bf16.mxu0 %v1903_v4  ;;  %1885 = vmatprep.subr.bf16.mxu1 %v1903_v4  ;;  %v1914_v17 = vld [vmem:[%s2544_s1] sm:$0xff]   ;;  %v1925_v23 = vld [vmem:[%s2545_s0 + $0x13c] ss:$12 sps:$4 sm:$0xff]   ;;  %v1938_v33 = vld [vmem:[%s2544_s1 + $0x90] sm:$0xff]  }
   0x9   :  { %674 = vmatprep.mubr.bf16.mxu1 %v1920_v12  ;;  %v1915_v19 = vld [vmem:[%s2545_s0] ss:$12 sps:$4 sm:$0xff]   ;;  %v1927_v24 = vld [vmem:[%s2545_s0 + $0x18] ss:$12 sps:$4 sm:$0xff]   ;;  %v1935_v31 = vld [vmem:[%s2545_s0 + $0x30] ss:$12 sps:$4 sm:$0xff]  }
   0xa   :  { %v1918_v20 = vld [vmem:[%s2545_s0 + $0x120] ss:$12 sps:$4 sm:$0xff]   ;;  %v1928_v26 = vld [vmem:[%s2545_s0 + $0x138] ss:$12 sps:$4 sm:$0xff]   ;;  %v1936_v32 = vld [vmem:[%s2545_s0 + $0x150] ss:$12 sps:$4 sm:$0xff]  }
   0xb   :  { %1560 = vmatpush3.bf16.msra.mxu0 %v1904_v5  ;;  %1893 = vmatpush3.bf16.msra.mxu1 %v1904_v5  ;;  %v1929_v25 = vld [vmem:[%s2544_s1 + $0xa8] sm:$0xff]   ;;  %v1930_v27 = vld [vmem:[%s2544_s1 + $0xa0] sm:$0xff]   ;;  %v1937_v30 = vld [vmem:[%s2544_s1 + $0x98] sm:$0xff]  }
   0xc   :  { %1561 = vmatprep.subr.bf16.mxu0 %v1905_v6  ;;  %1886 = vmatprep.subr.bf16.mxu1 %v1905_v6  ;;  %v1933_v29 = vld [vmem:[%s2545_s0 + $0x154] ss:$12 sps:$4 sm:$0xff]   ;;  %v1939_v34 = vld [vmem:[%s2545_s0 + $0x4c] ss:$12 sps:$4 sm:$0xff]   ;;  %v1947_v39 = vld [vmem:[%s2545_s0 + $0x64] ss:$12 sps:$4 sm:$0xff]  }
   0xd   :  { %v1941_v35 = vld [vmem:[%s2545_s0 + $0x16c] ss:$12 sps:$4 sm:$0xff]   ;;  %v1943_v37 = vld [vmem:[%s2545_s0 + $0x48] ss:$12 sps:$4 sm:$0xff]   ;;  %v1946_v40 = vld [vmem:[%s2544_s1 + $0x80] sm:$0xff]  }
   0xe   :  { %v1945_v36 = vld [vmem:[%s2544_s1 + $0x88] sm:$0xff]   ;;  %v1954_v45 = vld [vmem:[%s2545_s0 + $0x38] ss:$12 sps:$4 sm:$0xff]   ;;  %v1956_v47 = vld [vmem:[%s2545_s0 + $0x50] ss:$12 sps:$4 sm:$0xff]  }
   0xf   :  { %1562 = vmatpush3.bf16.msra.mxu0 %v1906_v7  ;;  %1894 = vmatpush3.bf16.msra.mxu1 %v1906_v7  ;;  %v1944_v38 = vld [vmem:[%s2545_s0 + $0x168] ss:$12 sps:$4 sm:$0xff]   ;;  %v1950_v42 = vld [vmem:[%s2545_s0 + $0x60] ss:$12 sps:$4 sm:$0xff]   ;;  %v1955_v46 = vld [vmem:[%s2545_s0 + $0x78] ss:$12 sps:$4 sm:$0xff]  }
  0x10   :  { %1563 = vmatprep.subr.bf16.mxu0 %v1907_v8  ;;  %1887 = vmatprep.subr.bf16.mxu1 %v1907_v8  ;;  %v1949_v41 = vld [vmem:[%s2545_s0 + $0x8] ss:$12 sps:$4 sm:$0xff]   ;;  %v1951_v43 = vld [vmem:[%s2545_s0 + $0x20] ss:$12 sps:$4 sm:$0xff]   ;;  %v1960_v50 = vld [vmem:[%s2545_s0 + $0x90] ss:$12 sps:$4 sm:$0xff]  }
  0x11   :  { %v1952_v44 = vld [vmem:[%s2545_s0 + $0x7c] ss:$12 sps:$4 sm:$0xff]   ;;  %v1957_v48 = vld [vmem:[%s2545_s0 + $0x94] ss:$12 sps:$4 sm:$0xff]   ;;  %v1962_v52 = vld [vmem:[%s2545_s0 + $0xac] ss:$12 sps:$4 sm:$0xff]  }
  0x12   :  { %v1959_v49 = vld [vmem:[%s2545_s0 + $0x68] ss:$12 sps:$4 sm:$0xff]   ;;  %v1961_v51 = vld [vmem:[%s2545_s0 + $0x80] ss:$12 sps:$4 sm:$0xff]   ;;  %v1964_v53 = vld [vmem:[%s2545_s0 + $0x98] ss:$12 sps:$4 sm:$0xff]  }
  0x13   :  { %1564 = vmatpush3.bf16.msra.mxu0 %v1908_v9  ;;  %1895 = vmatpush3.bf16.msra.mxu1 %v1908_v9  ;;  %v1965_v54 = vld [vmem:[%s2545_s0 + $0xa8] ss:$12 sps:$4 sm:$0xff]   ;;  %v1966_v55 = vld [vmem:[%s2545_s0 + $0xb0] ss:$12 sps:$4 sm:$0xff]   ;;  %v1970_v58 = vld [vmem:[%s2545_s0 + $0xc0] ss:$12 sps:$4 sm:$0xff]  }
  0x14   :  { %1565 = vmatprep.subr.bf16.mxu0 %v1909_v10  ;;  %1888 = vmatprep.subr.bf16.mxu1 %v1909_v10  ;;  %v1967_v56 = vld [vmem:[%s2545_s0 + $0xc4] ss:$12 sps:$4 sm:$0xff]   ;;  %v1969_v57 = vld [vmem:[%s2545_s0 + $0xc8] ss:$12 sps:$4 sm:$0xff]   ;;  %v1971_v59 = vld [vmem:[%s2545_s0 + $0xe0] ss:$12 sps:$4 sm:$0xff]  }
  0x15   :  { %v1972_v60 = vld [vmem:[%s2545_s0 + $0xdc] ss:$12 sps:$4 sm:$0xff]   ;;  %v1974_v61 = vld [vmem:[%s2545_s0 + $0xf8] ss:$12 sps:$4 sm:$0xff]   ;;  %v1977_v1 = vld [vmem:[%s2545_s0 + $0xf4] ss:$12 sps:$4 sm:$0xff]  }
  0x16   :  { %v1987_v62 = vld [vmem:[%s2546_s3 + $0x38] sm:$0xff]   ;;  %v1979_v2 = vld [vmem:[%s2545_s0 + $0x128] ss:$12 sps:$4 sm:$0xff]   ;;  %v1981_v5 = vld [vmem:[%s2545_s0 + $0x140] ss:$12 sps:$4 sm:$0xff]  }
  0x17   :  { %1566 = vmatpush3.bf16.msra.mxu0 %v1910_v13  ;;  %1896 = vmatpush3.bf16.msra.mxu1 %v1910_v13  ;;  %v1975_v63 = vld [vmem:[%s2545_s0 + $0xd8] ss:$12 sps:$4 sm:$0xff]   ;;  %v1976_v0 = vld [vmem:[%s2545_s0 + $0x110] ss:$12 sps:$4 sm:$0xff]   ;;  %v1989_v8 = vld [vmem:[%s2546_s3 + $0x28] sm:$0xff]  }
  0x18   :  { %1567 = vmatprep.subr.bf16.mxu0 %v1911_v14  ;;  %1889 = vmatprep.subr.bf16.mxu1 %v1911_v14  ;;  %v1988_v3 = vld [vmem:[%s2546_s3 + $0x30] sm:$0xff]   ;;  %v1982_v6 = vld [vmem:[%s2545_s0 + $0x10c] ss:$12 sps:$4 sm:$0xff]   ;;  %v1990_v11 = vld [vmem:[%s2546_s3 + $0x20] sm:$0xff]  }
  0x19   :  { %v1980_v4 = vld [vmem:[%s2545_s0 + $0xf0] ss:$12 sps:$4 sm:$0xff]   ;;  %v1984_v7 = vld [vmem:[%s2545_s0 + $0x158] ss:$12 sps:$4 sm:$0xff]   ;;  %v1985_v9 = vld [vmem:[%s2545_s0 + $0x108] ss:$12 sps:$4 sm:$0xff]  }
  0x1a   :  { %v1986_v10 = vld [vmem:[%s2545_s0 + $0x170] ss:$12 sps:$4 sm:$0xff]   ;;  %v1993_v14 = vld [vmem:[%s2546_s3 + $0x8] sm:$0xff]  }
  0x1b   :  { %1568 = vmatpush3.bf16.msra.mxu0 %v1912_v15  ;;  %1897 = vmatpush3.bf16.msra.mxu1 %v1912_v15  ;;  %v1991_v12 = vld [vmem:[%s2546_s3 + $0x18] sm:$0xff]   ;;  %v1992_v13 = vld [vmem:[%s2546_s3 + $0x10] sm:$0xff]   ;;  %v1994_v15 = vld [vmem:[%s2546_s3] sm:$0xff]  }
  0x1c   :  { %1569 = vmatprep.subr.bf16.mxu0 %v1913_v16  ;;  %1890 = vmatprep.subr.bf16.mxu1 %v1913_v16  ;;  %v1995_v16 = vld [vmem:[%s2547_s5 + $0x38] sm:$0xff]  }
  0x1f   :  { %1570 = vmatpush3.bf16.msra.mxu0 %v1914_v17  ;;  %1898 = vmatpush3.bf16.msra.mxu1 %v1914_v17  ;;  %v1996_v17 = vld [vmem:[%s2547_s5 + $0x30] sm:$0xff]  }
  0x20   :  { %1739 = vmatprep.subr.bf16.mxu1 %v1921_v18  ;;  %1835 = vmatprep.subr.bf16.mxu0 %v1995_v16 }
  0x22   :  { %579 = vmatmul.mubr.bf16.vlgmr.msra.gmra.mxu0 %v1915_v19  ;;  %675 = vmatmul.mubr.bf16.vlgmr.msra.gmra.mxu1 %v1918_v20 }
  0x23   :  { %1740 = vmatpush3.bf16.msra.mxu1 %v1921_v18  ;;  %586 = vmatprep.mubr.bf16.mxu0 %v1923_v21  ;;  %v1997_v18 = vld [vmem:[%s2547_s5 + $0x28] sm:$0xff]  }
  0x24   :  { %1741 = vmatprep.subr.bf16.mxu1 %v1922_v22  ;;  %682 = vmatprep.mubr.bf16.mxu1 %v1925_v23  ;;  %v1998_v23 = vld [vmem:[%s2547_s5 + $0x20] sm:$0xff]  }
  0x25   :  { %1836 = vmatpush3.bf16.msra.mxu0 %v1995_v16 }
  0x26   :  { %1837 = vmatprep.subr.bf16.mxu0 %v1996_v17 }
  0x27   :  { %1742 = vmatpush3.bf16.msra.mxu1 %v1922_v22 }
  0x28   :  { %1743 = vmatprep.subr.bf16.mxu1 %v1929_v25 }
  0x29   :  { %1838 = vmatpush3.bf16.msra.mxu0 %v1996_v17 }
  0x2a   :  { %587 = vmatmul.mubr.bf16.gmra.mxu0 %v1927_v24  ;;  %683 = vmatmul.mubr.bf16.gmra.mxu1 %v1928_v26 }
  0x2b   :  { %1744 = vmatpush3.bf16.msra.mxu1 %v1929_v25  ;;  %594 = vmatprep.mubr.bf16.mxu0 %v1931_v28 }
  0x2c   :  { %1745 = vmatprep.subr.bf16.mxu1 %v1930_v27  ;;  %690 = vmatprep.mubr.bf16.mxu1 %v1933_v29  ;;  %v1999_v29 = vld [vmem:[%s2547_s5 + $0x18] sm:$0xff]  }
  0x2d   :  { %1839 = vmatprep.subr.bf16.mxu0 %v1997_v18 }
  0x2e   :  { %1840 = vmatpush3.bf16.msra.mxu0 %v1997_v18 }
  0x2f   :  { %1746 = vmatpush3.bf16.msra.mxu1 %v1930_v27  ;;  %1841 = vmatprep.subr.bf16.mxu0 %v1998_v23 }
  0x30   :  { %1747 = vmatprep.subr.bf16.mxu1 %v1937_v30 }
  0x32   :  { %595 = vmatmul.mubr.bf16.gmra.mxu0 %v1935_v31  ;;  %691 = vmatmul.mubr.bf16.gmra.mxu1 %v1936_v32 }
  0x33   :  { %1748 = vmatpush3.bf16.msra.mxu1 %v1937_v30  ;;  %602 = vmatprep.mubr.bf16.mxu0 %v1939_v34 }
  0x34   :  { %1749 = vmatprep.subr.bf16.mxu1 %v1938_v33  ;;  %698 = vmatprep.mubr.bf16.mxu1 %v1941_v35  ;;  %v2000_v35 = vld [vmem:[%s2547_s5 + $0x10] sm:$0xff]  }
  0x35   :  { %1842 = vmatpush3.bf16.msra.mxu0 %v1998_v23 }
  0x36   :  { %1843 = vmatprep.subr.bf16.mxu0 %v1999_v29 }
  0x37   :  { %1750 = vmatpush3.bf16.msra.mxu1 %v1938_v33 }
  0x38   :  { %1751 = vmatprep.subr.bf16.mxu1 %v1945_v36 }
  0x39   :  { %1844 = vmatpush3.bf16.msra.mxu0 %v1999_v29 }
  0x3a   :  { %603 = vmatmul.mubr.bf16.gmra.mxu0 %v1943_v37  ;;  %699 = vmatmul.mubr.bf16.gmra.mxu1 %v1944_v38 }
  0x3b   :  { %1752 = vmatpush3.bf16.msra.mxu1 %v1945_v36  ;;  %610 = vmatprep.mubr.bf16.mxu0 %v1947_v39 }
  0x3c   :  { %1753 = vmatprep.subr.bf16.mxu1 %v1946_v40  ;;  %1755 = vmatprep.mubr.bf16.mxu1 %v1949_v41 }
  0x3d   :  { %1845 = vmatprep.subr.bf16.mxu0 %v2000_v35 }
  0x3e   :  { %1846 = vmatpush3.bf16.msra.mxu0 %v2000_v35 }
  0x3f   :  { %1754 = vmatpush3.bf16.msra.mxu1 %v1946_v40 }
  0x40   :  { %1787 = vmatprep.subr.bf16.mxu1 %v1987_v62 }
  0x42   :  { %611 = vmatmul.mubr.bf16.gmra.mxu0 %v1950_v42  ;;  %1756 = vmatmul.mubr.bf16.vlgmr.msra.gmra.mxu1 %v1951_v43 }
  0x43   :  { %618 = vmatprep.mubr.bf16.mxu0 %v1952_v44  ;;  %1759 = vmatprep.mubr.bf16.mxu1 %v1954_v45 }
  0x44   :  { %1788 = vmatpush3.bf16.msra.mxu1 %v1987_v62 }
  0x45   :  { %1789 = vmatprep.subr.bf16.mxu1 %v1988_v3 }
  0x48   :  { %1790 = vmatpush3.bf16.msra.mxu1 %v1988_v3 }
  0x49   :  { %1791 = vmatprep.subr.bf16.mxu1 %v1989_v8 }
  0x4a   :  { %619 = vmatmul.mubr.bf16.gmra.mxu0 %v1955_v46  ;;  %1760 = vmatmul.mubr.bf16.gmra.mxu1 %v1956_v47 }
  0x4b   :  { %626 = vmatprep.mubr.bf16.mxu0 %v1957_v48  ;;  %1763 = vmatprep.mubr.bf16.mxu1 %v1959_v49 }
  0x4c   :  { %1792 = vmatpush3.bf16.msra.mxu1 %v1989_v8 }
  0x4d   :  { %1793 = vmatprep.subr.bf16.mxu1 %v1990_v11 }
  0x50   :  { %1794 = vmatpush3.bf16.msra.mxu1 %v1990_v11 }
  0x51   :  { %1795 = vmatprep.subr.bf16.mxu1 %v1991_v12 }
  0x52   :  { %627 = vmatmul.mubr.bf16.gmra.mxu0 %v1960_v50  ;;  %1764 = vmatmul.mubr.bf16.gmra.mxu1 %v1961_v51 }
  0x53   :  { %634 = vmatprep.mubr.bf16.mxu0 %v1962_v52  ;;  %1767 = vmatprep.mubr.bf16.mxu1 %v1964_v53 }
  0x54   :  { %1796 = vmatpush3.bf16.msra.mxu1 %v1991_v12 }
  0x55   :  { %1797 = vmatprep.subr.bf16.mxu1 %v1992_v13 }
  0x58   :  { %1798 = vmatpush3.bf16.msra.mxu1 %v1992_v13 }
  0x59   :  { %1799 = vmatprep.subr.bf16.mxu1 %v1993_v14 }
  0x5a   :  { %635 = vmatmul.mubr.bf16.gmra.mxu0 %v1965_v54  ;;  %1768 = vmatmul.mubr.bf16.gmra.mxu1 %v1966_v55 }
  0x5b   :  { %642 = vmatprep.mubr.bf16.mxu0 %v1967_v56  ;;  %1771 = vmatprep.mubr.bf16.mxu1 %v1969_v57 }
  0x5c   :  { %1800 = vmatpush3.bf16.msra.mxu1 %v1993_v14 }
  0x5d   :  { %1801 = vmatprep.subr.bf16.mxu1 %v1994_v15 }
  0x60   :  { %1802 = vmatpush3.bf16.msra.mxu1 %v1994_v15 }
  0x62   :  { %643 = vmatmul.mubr.bf16.gmra.mxu0 %v1970_v58  ;;  %1772 = vmatmul.mubr.bf16.gmra.mxu1 %v1971_v59 }
  0x63   :  { %650 = vmatprep.mubr.bf16.mxu0 %v1972_v60  ;;  %1775 = vmatprep.mubr.bf16.mxu1 %v1974_v61 }
  0x6a   :  { %651 = vmatmul.mubr.bf16.gmra.mxu0 %v1975_v63  ;;  %1776 = vmatmul.mubr.bf16.gmra.mxu1 %v1976_v0 }
  0x6b   :  { %658 = vmatprep.mubr.bf16.mxu0 %v1977_v1  ;;  %1779 = vmatprep.mubr.bf16.mxu1 %v1979_v2  ;;  %v2320_v2 = vld [vmem:[%s2548_s2] ss:$0 sm:$0xff] }
  0x72   :  { %659 = vmatmul.mubr.bf16.gmra.mxu0 %v1980_v4  ;;  %1780 = vmatmul.mubr.bf16.gmra.mxu1 %v1981_v5 }
  0x73   :  { %666 = vmatprep.mubr.bf16.mxu0 %v1982_v6  ;;  %1783 = vmatprep.mubr.bf16.mxu1 %v1984_v7 }
  0x7a   :  { %667 = vmatmul.mubr.bf16.gmra.mxu0 %v1985_v9  ;;  %1784 = vmatmul.mubr.bf16.gmra.mxu1 %v1986_v10 }
  0xe2   :  { %v1571_v19 = vpop.f32.mrf.mxu0  ;;  %v1643_v20 = vpop.f32.mrf.mxu1 }
  0xe4   :  { %v1572_v21 = vpop.f32.mrf.mxu0  ;;  %v1644_v22 = vpop.f32.mrf.mxu1 }
  0xe5   :  { %v2295_v24 = vadd.f32 %v1644_v22, %v1643_v20  ;;  %v1573_v61 = vadd.f32 %v1572_v21, %v1571_v19 }
  0xe6   :  { %v1574_v25 = vpop.f32.mrf.mxu0  ;;  %v1646_v26 = vpop.f32.mrf.mxu1 }
  0xe7   :  { %v581_v7 = vadd.f32 %v1573_v61, %v2320_v2 }
  0xe8   :  { %v1575_v27 = vpop.f32.mrf.mxu0  ;;  %v1647_v28 = vpop.f32.mrf.mxu1 }
  0xe9   :  { %v2300_v30 = vadd.f32 %v1647_v28, %v1646_v26  ;;  %v1576_v4 = vadd.f32 %v1575_v27, %v1574_v25 }
  0xea   :  { %v1577_v31 = vpop.f32.mrf.mxu0  ;;  %v1649_v32 = vpop.f32.mrf.mxu1 }
  0xeb   :  { %v584_v14 = vadd.f32 %v1576_v4, %v2320_v2 }
  0xec   :  { %v1578_v33 = vpop.f32.mrf.mxu0  ;;  %v1650_v34 = vpop.f32.mrf.mxu1 }
  0xed   :  { %v2305_v36 = vadd.f32 %v1650_v34, %v1649_v32  ;;  %v1579_v0 = vadd.f32 %v1578_v33, %v1577_v31 }
  0xee   :  { %v1580_v37 = vpop.f32.mrf.mxu0  ;;  %v1652_v38 = vpop.f32.mrf.mxu1 }
  0xef   :  { %v589_v9 = vadd.f32 %v1579_v0, %v2320_v2 }
  0xf0   :  { %v1581_v39 = vpop.f32.mrf.mxu0  ;;  %v1653_v40 = vpop.f32.mrf.mxu1 }
  0xf1   :  { %v2307_v41 = vadd.f32 %v1653_v40, %v1652_v38  ;;  %v1582_v62 = vadd.f32 %v1581_v39, %v1580_v37 }
  0xf2   :  { %v1583_v42 = vpop.f32.mrf.mxu0  ;;  %v1655_v43 = vpop.f32.mrf.mxu1 }
  0xf3   :  { %v592_v8 = vadd.f32 %v1582_v62, %v2320_v2 }
  0xf4   :  { %v1584_v44 = vpop.f32.mrf.mxu0  ;;  %v1656_v45 = vpop.f32.mrf.mxu1 }
  0xf5   :  { %v2309_v46 = vadd.f32 %v1656_v45, %v1655_v43  ;;  %v1585_v18 = vadd.f32 %v1584_v44, %v1583_v42 }
  0xf6   :  { %v1586_v47 = vpop.f32.mrf.mxu0  ;;  %v1658_v48 = vpop.f32.mrf.mxu1 }
  0xf7   :  { %v597_v34 = vadd.f32 %v1585_v18, %v2320_v2 }
  0xf8   :  { %v1587_v49 = vpop.f32.mrf.mxu0  ;;  %v1659_v50 = vpop.f32.mrf.mxu1 }
  0xf9   :  { %v2311_v51 = vadd.f32 %v1659_v50, %v1658_v48  ;;  %v1588_v26 = vadd.f32 %v1587_v49, %v1586_v47 }
  0xfa   :  { %v1589_v52 = vpop.f32.mrf.mxu0  ;;  %v1661_v53 = vpop.f32.mrf.mxu1 }
  0xfb   :  { %v600_v44 = vadd.f32 %v1588_v26, %v2320_v2 }
  0xfc   :  { %v1590_v54 = vpop.f32.mrf.mxu0  ;;  %v1662_v55 = vpop.f32.mrf.mxu1 }
  0xfd   :  { %v2313_v56 = vadd.f32 %v1662_v55, %v1661_v53  ;;  %v1591_v21 = vadd.f32 %v1590_v54, %v1589_v52 }
  0xfe   :  { %v1592_v57 = vpop.f32.mrf.mxu0  ;;  %v1664_v58 = vpop.f32.mrf.mxu1 }
  0xff   :  { %v605_v38 = vadd.f32 %v1591_v21, %v2320_v2 }
 0x100   :  { %v1593_v59 = vpop.f32.mrf.mxu0  ;;  %v1665_v60 = vpop.f32.mrf.mxu1 }
 0x101   :  { %v2315_v63 = vadd.f32 %v1665_v60, %v1664_v58  ;;  %v1594_v19 = vadd.f32 %v1593_v59, %v1592_v57 }
 0x102   :  { %v1595_v1 = vpop.f32.mrf.mxu0  ;;  %v1757_v3 = vpop.f32.mrf.mxu1 }
 0x103   :  { %v750_v15 = vadd.f32 %v1757_v3, %v589_v9  ;;  %v608_v35 = vadd.f32 %v1594_v19, %v2320_v2 }
 0x104   :  { %v1596_v5 = vpop.f32.mrf.mxu0  ;;  %v741_v6 = vpop.f32.mrf.mxu1 }
 0x105   :  { %v742_v12 = vadd.f32 %v741_v6, %v581_v7  ;;  %v870_v29 = vmax.f32 %v750_v15, 0.0  ;;  %v1597_v49 = vadd.f32 %v1596_v5, %v1595_v1 }
 0x106   :  { %v1598_v10 = vpop.f32.mrf.mxu0  ;;  %v1758_v11 = vpop.f32.mrf.mxu1 }
 0x107   :  { %v753_v13 = vadd.f32 %v1758_v11, %v592_v8  ;;  %v868_v27 = vmax.f32 %v742_v12, 0.0  ;;  %v613_v4 = vadd.f32 %v1597_v49, %v2320_v2 }
 0x108   :  { %v1599_v16 = vpop.f32.mrf.mxu0  ;;  %v744_v17 = vpop.f32.mrf.mxu1 }
 0x109   :  { %v745_v20 = vadd.f32 %v744_v17, %v584_v14  ;;  %v871_v22 = vmax.f32 %v753_v13, 0.0  ;;  %v1600_v58 = vadd.f32 %v1599_v16, %v1598_v10 }
 0x10a   :  { %v1601_v23 = vpop.f32.mrf.mxu0  ;;  %v1761_v25 = vpop.f32.mrf.mxu1 }
 0x10b   :  { %v869_v28 = vmax.f32 %v745_v20, 0.0  ;;  %v901_v37 = vpack.c.bf16 %v871_v22, %v870_v29  ;;  %v766_v45 = vadd.f32 %v1761_v25, %v605_v38  ;;  %v616_v10 = vadd.f32 %v1600_v58, %v2320_v2 }
 0x10c   :  { %v1602_v31 = vpop.f32.mrf.mxu0  ;;  %v757_v32 = vpop.f32.mrf.mxu1 }
 0x10d   :  { %v900_v33 = vpack.c.bf16 %v869_v28, %v868_v27  ;;  %v758_v42 = vadd.f32 %v757_v32, %v597_v34  ;;  %v1603_v53 = vadd.f32 %v1602_v31, %v1601_v23  ;;  %v874_v61 = vmax.f32 %v766_v45, 0.0 }
 0x10e   :  { %v1604_v39 = vpop.f32.mrf.mxu0  ;;  %v1762_v40 = vpop.f32.mrf.mxu1 }
 0x10f   :  { %v769_v43 = vadd.f32 %v1762_v40, %v608_v35  ;;  %1803 = vmatprep.mubr.bf16.mxu1 %v900_v33  ;;  %v872_v59 = vmax.f32 %v758_v42, 0.0  ;;  %v621_v1 = vadd.f32 %v1603_v53, %v2320_v2 }
 0x110   :  { %v1605_v47 = vpop.f32.mrf.mxu0  ;;  %v760_v48 = vpop.f32.mrf.mxu1  ;;  %1804 = vmatmul.mubr.bf16.vlgmr.msra.gmra.mxu1 %v901_v37 }
 0x111   :  { %v1606_v50 = vadd.f32 %v1605_v47, %v1604_v39  ;;  %v761_v52 = vadd.f32 %v760_v48, %v600_v44  ;;  %v875_v54 = vmax.f32 %v769_v43, 0.0 }
 0x112   :  { %v1607_v55 = vpop.f32.mrf.mxu0  ;;  %v1765_v57 = vpop.f32.mrf.mxu1 }
 0x113   :  { %v873_v60 = vmax.f32 %v761_v52, 0.0  ;;  %v624_v6 = vadd.f32 %v1606_v50, %v2320_v2  ;;  %v903_v7 = vpack.c.bf16 %v875_v54, %v874_v61  ;;  %v782_v12 = vadd.f32 %v1765_v57, %v621_v1 }
 0x114   :  { %v1608_v62 = vpop.f32.mrf.mxu0  ;;  %v773_v0 = vpop.f32.mrf.mxu1 }
 0x115   :  { %v902_v3 = vpack.c.bf16 %v873_v60, %v872_v59  ;;  %v774_v9 = vadd.f32 %v773_v0, %v613_v4  ;;  %v1609_v15 = vadd.f32 %v1608_v62, %v1607_v55  ;;  %v878_v23 = vmax.f32 %v782_v12, 0.0 }
 0x116   :  { %v1610_v5 = vpop.f32.mrf.mxu0  ;;  %v1766_v8 = vpop.f32.mrf.mxu1 }
 0x117   :  { %v785_v11 = vadd.f32 %v1766_v8, %v624_v6  ;;  %1807 = vmatprep.mubr.bf16.mxu1 %v902_v3  ;;  %v876_v20 = vmax.f32 %v774_v9, 0.0  ;;  %v629_v29 = vadd.f32 %v1609_v15, %v2320_v2 }
 0x118   :  { %v1611_v13 = vpop.f32.mrf.mxu0  ;;  %v776_v14 = vpop.f32.mrf.mxu1  ;;  %1808 = vmatmul.mubr.bf16.gmra.mxu1 %v903_v7 }
 0x119   :  { %v777_v16 = vadd.f32 %v776_v14, %v616_v10  ;;  %v879_v17 = vmax.f32 %v785_v11, 0.0  ;;  %v1612_v21 = vadd.f32 %v1611_v13, %v1610_v5 }
 0x11a   :  { %v1613_v18 = vpop.f32.mrf.mxu0  ;;  %v1769_v19 = vpop.f32.mrf.mxu1 }
 0x11b   :  { %v877_v22 = vmax.f32 %v777_v16, 0.0  ;;  %v905_v31 = vpack.c.bf16 %v879_v17, %v878_v23  ;;  %v632_v37 = vadd.f32 %v1612_v21, %v2320_v2 }
 0x11c   :  { %v1614_v25 = vpop.f32.mrf.mxu0  ;;  %v789_v26 = vpop.f32.mrf.mxu1 }
 0x11d   :  { %v904_v27 = vpack.c.bf16 %v877_v22, %v876_v20  ;;  %v1615_v28 = vadd.f32 %v1614_v25, %v1613_v18  ;;  %v790_v35 = vadd.f32 %v789_v26, %v629_v29  ;;  %v685_v25 = vadd.f32 %v2305_v36, %v2320_v2 }
 0x11e   :  { %v1616_v32 = vpop.f32.mrf.mxu0  ;;  %v1770_v33 = vpop.f32.mrf.mxu1  ;;  %v680_v36 = vadd.f32 %v2300_v30, %v2320_v2 }
 0x11f   :  { %v637_v34 = vadd.f32 %v1615_v28, %v2320_v2  ;;  %1811 = vmatprep.mubr.bf16.mxu1 %v904_v27  ;;  %v880_v47 = vmax.f32 %v790_v35, 0.0  ;;  %v677_v28 = vadd.f32 %v2295_v24, %v2320_v2 }
 0x120   :  { %v1617_v38 = vpop.f32.mrf.mxu0  ;;  %v792_v39 = vpop.f32.mrf.mxu1  ;;  %1812 = vmatmul.mubr.bf16.gmra.mxu1 %v905_v31 }
 0x121   :  { %v1618_v40 = vadd.f32 %v1617_v38, %v1616_v32  ;;  %v793_v42 = vadd.f32 %v792_v39, %v632_v37  ;;  %v798_v45 = vadd.f32 %v1769_v19, %v637_v34  ;;  %v688_v34 = vadd.f32 %v2307_v41, %v2320_v2 }
 0x122   :  { %v1619_v43 = vpop.f32.mrf.mxu0  ;;  %v1773_v44 = vpop.f32.mrf.mxu1  ;;  %v701_v41 = vadd.f32 %v2313_v56, %v2320_v2 }
 0x123   :  { %v640_v48 = vadd.f32 %v1618_v40, %v2320_v2  ;;  %v881_v49 = vmax.f32 %v793_v42, 0.0  ;;  %v882_v59 = vmax.f32 %v798_v45, 0.0 }
 0x124   :  { %v1620_v50 = vpop.f32.mrf.mxu0  ;;  %v805_v52 = vpop.f32.mrf.mxu1 }
 0x125   :  { %v801_v53 = vadd.f32 %v1770_v33, %v640_v48  ;;  %v906_v54 = vpack.c.bf16 %v881_v49, %v880_v47  ;;  %v1621_v55 = vadd.f32 %v1620_v50, %v1619_v43 }
 0x126   :  { %v1622_v57 = vpop.f32.mrf.mxu0  ;;  %v1774_v58 = vpop.f32.mrf.mxu1 }
 0x127   :  { %v883_v60 = vmax.f32 %v801_v53, 0.0  ;;  %v645_v61 = vadd.f32 %v1621_v55, %v2320_v2  ;;  %1815 = vmatprep.mubr.bf16.mxu1 %v906_v54 }
 0x128   :  { %v1623_v62 = vpop.f32.mrf.mxu0  ;;  %v808_v0 = vpop.f32.mrf.mxu1 }
 0x129   :  { %v1624_v3 = vadd.f32 %v1623_v62, %v1622_v57  ;;  %v907_v4 = vpack.c.bf16 %v883_v60, %v882_v59  ;;  %v806_v1 = vadd.f32 %v805_v52, %v645_v61  ;;  %v693_v60 = vadd.f32 %v2309_v46, %v2320_v2 }
 0x12a   :  { %v1625_v6 = vpop.f32.mrf.mxu0  ;;  %v2339_v7 = vpop.f32.mrf.mxu1  ;;  %v704_v62 = vadd.f32 %v2315_v63, %v2320_v2 }
 0x12b   :  { %v648_v5 = vadd.f32 %v1624_v3, %v2320_v2  ;;  %1816 = vmatmul.mubr.bf16.gmra.mxu1 %v907_v4  ;;  %v884_v14 = vmax.f32 %v806_v1, 0.0 }
 0x12c   :  { %v1626_v8 = vpop.f32.mrf.mxu0  ;;  %v821_v9 = vpop.f32.mrf.mxu1 }
 0x12d   :  { %v809_v11 = vadd.f32 %v808_v0, %v648_v5  ;;  %v1627_v10 = vadd.f32 %v1626_v8, %v1625_v6 }
 0x12e   :  { %v1628_v12 = vpop.f32.mrf.mxu0  ;;  %v2342_v13 = vpop.f32.mrf.mxu1 }
 0x12f   :  { %v885_v15 = vmax.f32 %v809_v11, 0.0  ;;  %v653_v16 = vadd.f32 %v1627_v10, %v2320_v2  ;;  %v696_v10 = vadd.f32 %v2311_v51, %v2320_v2 }
 0x130   :  { %v1629_v17 = vpop.f32.mrf.mxu0  ;;  %v824_v18 = vpop.f32.mrf.mxu1 }
 0x131   :  { %v908_v19 = vpack.c.bf16 %v885_v15, %v884_v14  ;;  %v1630_v20 = vadd.f32 %v1629_v17, %v1628_v12  ;;  %v814_v26 = vadd.f32 %v1773_v44, %v653_v16 }
 0x132   :  { %v1631_v21 = vpop.f32.mrf.mxu0  ;;  %v1781_v22 = vpop.f32.mrf.mxu1 }
 0x133   :  { %v656_v23 = vadd.f32 %v1630_v20, %v2320_v2  ;;  %1819 = vmatprep.mubr.bf16.mxu1 %v908_v19  ;;  %v846_v32 = vadd.f32 %v1781_v22, %v685_v25  ;;  %v886_v42 = vmax.f32 %v814_v26, 0.0 }
 0x134   :  { %v1632_v27 = vpop.f32.mrf.mxu0  ;;  %v837_v29 = vpop.f32.mrf.mxu1 }
 0x135   :  { %v817_v31 = vadd.f32 %v1774_v58, %v656_v23  ;;  %v1633_v33 = vadd.f32 %v1632_v27, %v1631_v21  ;;  %v838_v39 = vadd.f32 %v837_v29, %v677_v28  ;;  %v894_v45 = vmax.f32 %v846_v32, 0.0  ;;  %v2001_v29 = vld [vmem:[%s2547_s5 + $0x8] sm:$0xff]  }
 0x136   :  { %v1634_v35 = vpop.f32.mrf.mxu0  ;;  %v1782_v37 = vpop.f32.mrf.mxu1  ;;  %1847 = vmatprep.subr.bf16.mxu0 %v2001_v29 }
 0x137   :  { %v887_v38 = vmax.f32 %v817_v31, 0.0  ;;  %v849_v40 = vadd.f32 %v1782_v37, %v688_v34  ;;  %v661_v43 = vadd.f32 %v1633_v33, %v2320_v2  ;;  %v892_v54 = vmax.f32 %v838_v39, 0.0  ;;  %1848 = vmatpush3.bf16.msra.mxu0 %v2001_v29  ;;  %v2377_v31 = vld [vmem:[%s2549_s4] ss:$0 sm:$0xff] }
 0x138   :  { %v1635_v44 = vpop.f32.mrf.mxu0  ;;  %v840_v24 = vpop.f32.mrf.mxu1 }
 0x139   :  { %v895_v47 = vmax.f32 %v849_v40, 0.0  ;;  %v1636_v48 = vadd.f32 %v1635_v44, %v1634_v35  ;;  %v841_v49 = vadd.f32 %v840_v24, %v680_v36  ;;  %v909_v53 = vpack.c.bf16 %v887_v38, %v886_v42 }
 0x13a   :  { %v1637_v50 = vpop.f32.mrf.mxu0  ;;  %v1785_v52 = vpop.f32.mrf.mxu1  ;;  %v822_v58 = vadd.f32 %v821_v9, %v661_v43 }
 0x13b   :  { %v913_v55 = vpack.c.bf16 %v895_v47, %v894_v45  ;;  %v664_v57 = vadd.f32 %v1636_v48, %v2320_v2  ;;  %v893_v30 = vmax.f32 %v841_v49, 0.0  ;;  %1820 = vmatmul.mubr.bf16.gmra.mxu1 %v909_v53  ;;  %v862_v56 = vadd.f32 %v1785_v52, %v701_v41 }
 0x13c   :  { %v1638_v59 = vpop.f32.mrf.mxu0  ;;  %v853_v61 = vpop.f32.mrf.mxu1  ;;  %v888_v12 = vmax.f32 %v822_v58, 0.0 }
 0x13d   :  { %v825_v0 = vadd.f32 %v824_v18, %v664_v57  ;;  %v912_v3 = vpack.c.bf16 %v893_v30, %v892_v54  ;;  %v1639_v4 = vadd.f32 %v1638_v59, %v1637_v50  ;;  %v854_v6 = vadd.f32 %v853_v61, %v693_v60 }
 0x13e   :  { %v1640_v1 = vpop.f32.mrf.mxu0  ;;  %v1786_v5 = vpop.f32.mrf.mxu1  ;;  %v898_v15 = vmax.f32 %v862_v56, 0.0 }
 0x13f   :  { %v889_v8 = vmax.f32 %v825_v0, 0.0  ;;  %v669_v11 = vadd.f32 %v1639_v4, %v2320_v2  ;;  %v865_v9 = vadd.f32 %v1786_v5, %v704_v62  ;;  %v896_v18 = vmax.f32 %v854_v6, 0.0 }
 0x140   :  { %v1641_v46 = vpop.f32.mrf.mxu0  ;;  %v856_v14 = vpop.f32.mrf.mxu1 }
 0x141   :  { %v899_v16 = vmax.f32 %v865_v9, 0.0  ;;  %v1642_v63 = vadd.f32 %v1641_v46, %v1640_v1  ;;  %v857_v17 = vadd.f32 %v856_v14, %v696_v10  ;;  %v910_v19 = vpack.c.bf16 %v889_v8, %v888_v12 }
 0x142   :  { %v830_v20 = vadd.f32 %v2339_v7, %v669_v11 }
 0x143   :  { %v915_v21 = vpack.c.bf16 %v899_v16, %v898_v15  ;;  %v672_v22 = vadd.f32 %v1642_v63, %v2320_v2  ;;  %v897_v23 = vmax.f32 %v857_v17, 0.0  ;;  %1823 = vmatprep.mubr.bf16.mxu1 %v910_v19  ;;  %v2002_v2 = vld [vmem:[%s2547_s5] sm:$0xff]  }
 0x144   :  { %v890_v51 = vmax.f32 %v830_v20, 0.0  ;;  %1849 = vmatprep.subr.bf16.mxu0 %v2002_v2 }
 0x145   :  { %v833_v25 = vadd.f32 %v2342_v13, %v672_v22  ;;  %v914_v26 = vpack.c.bf16 %v897_v23, %v896_v18  ;;  %1850 = vmatpush3.bf16.msra.mxu0 %v2002_v2 }
 0x147   :  { %v891_v27 = vmax.f32 %v833_v25, 0.0 }
 0x149   :  { %v911_v28 = vpack.c.bf16 %v891_v27, %v890_v51 }
 0x14b   :  { %1824 = vmatmul.mubr.bf16.gmra.mxu1 %v911_v28 }
 0x14c   :  { %1827 = vmatprep.mubr.bf16.mxu1 %v912_v3 }
 0x153   :  { %1828 = vmatmul.mubr.bf16.gmra.mxu1 %v913_v55 }
 0x154   :  { %1831 = vmatprep.mubr.bf16.mxu1 %v914_v26 }
 0x15b   :  { %1832 = vmatmul.mubr.bf16.gmra.mxu1 %v915_v21 }
 0x1d0   :  { %v1805_v7 = vpop.f32.mrf.mxu1 }
 0x1d1   :  { %v1030_v35 = vadd.f32 %v1805_v7, %v2377_v31 }
 0x1d2   :  { %v1021_v13 = vpop.f32.mrf.mxu1 }
 0x1d3   :  { %v1022_v33 = vadd.f32 %v2377_v31, %v1021_v13  ;;  %v1150_v43 = vmax.f32 %v1030_v35, 0.0 }
 0x1d4   :  { %v1806_v32 = vpop.f32.mrf.mxu1 }
 0x1d5   :  { %v1033_v34 = vadd.f32 %v1806_v32, %v2377_v31  ;;  %v1148_v36 = vmax.f32 %v1022_v33, 0.0 }
 0x1d6   :  { %v1024_v37 = vpop.f32.mrf.mxu1 }
 0x1d7   :  { %v1025_v38 = vadd.f32 %v2377_v31, %v1024_v37  ;;  %v1151_v39 = vmax.f32 %v1033_v34, 0.0 }
 0x1d8   :  { %v1809_v40 = vpop.f32.mrf.mxu1 }
 0x1d9   :  { %v1149_v42 = vmax.f32 %v1025_v38, 0.0  ;;  %v1181_v45 = vpack.c.bf16 %v1151_v39, %v1150_v43  ;;  %v1046_v50 = vadd.f32 %v1809_v40, %v2377_v31 }
 0x1da   :  { %v1037_v44 = vpop.f32.mrf.mxu1 }
 0x1db   :  { %v1180_v24 = vpack.c.bf16 %v1149_v42, %v1148_v36  ;;  %v1038_v48 = vadd.f32 %v2377_v31, %v1037_v44  ;;  %v1154_v30 = vmax.f32 %v1046_v50, 0.0 }
 0x1dc   :  { %v1810_v47 = vpop.f32.mrf.mxu1 }
 0x1dd   :  { %v1049_v49 = vadd.f32 %v1810_v47, %v2377_v31  ;;  %1851 = vmatprep.mubr.bf16.mxu0 %v1180_v24  ;;  %v1152_v55 = vmax.f32 %v1038_v48, 0.0 }
 0x1de   :  { %v1040_v41 = vpop.f32.mrf.mxu1  ;;  %1852 = vmatmul.mubr.bf16.vlgmr.msra.gmra.mxu0 %v1181_v45 }
 0x1df   :  { %v1041_v52 = vadd.f32 %v2377_v31, %v1040_v41  ;;  %v1155_v53 = vmax.f32 %v1049_v49, 0.0 }
 0x1e0   :  { %v1813_v54 = vpop.f32.mrf.mxu1 }
 0x1e1   :  { %v1153_v57 = vmax.f32 %v1041_v52, 0.0  ;;  %v1183_v60 = vpack.c.bf16 %v1155_v53, %v1154_v30  ;;  %v1062_v3 = vadd.f32 %v1813_v54, %v2377_v31 }
 0x1e2   :  { %v1053_v58 = vpop.f32.mrf.mxu1 }
 0x1e3   :  { %v1182_v59 = vpack.c.bf16 %v1153_v57, %v1152_v55  ;;  %v1054_v62 = vadd.f32 %v2377_v31, %v1053_v58  ;;  %v1158_v8 = vmax.f32 %v1062_v3, 0.0 }
 0x1e4   :  { %v1814_v61 = vpop.f32.mrf.mxu1 }
 0x1e5   :  { %v1065_v0 = vadd.f32 %v1814_v61, %v2377_v31  ;;  %1855 = vmatprep.mubr.bf16.mxu0 %v1182_v59  ;;  %v1156_v1 = vmax.f32 %v1054_v62, 0.0 }
 0x1e6   :  { %v1056_v56 = vpop.f32.mrf.mxu1  ;;  %1856 = vmatmul.mubr.bf16.gmra.mxu0 %v1183_v60 }
 0x1e7   :  { %v1057_v4 = vadd.f32 %v2377_v31, %v1056_v56  ;;  %v1159_v6 = vmax.f32 %v1065_v0, 0.0 }
 0x1e9   :  { %v1157_v5 = vmax.f32 %v1057_v4, 0.0  ;;  %v1185_v10 = vpack.c.bf16 %v1159_v6, %v1158_v8 }
 0x1eb   :  { %v1184_v11 = vpack.c.bf16 %v1157_v5, %v1156_v1  ;;  %v1817_v9 = vpop.f32.mrf.mxu1 }
 0x1ec   :  { %v1078_v16 = vadd.f32 %v1817_v9, %v2377_v31 }
 0x1ed   :  { %v1069_v12 = vpop.f32.mrf.mxu1  ;;  %1859 = vmatprep.mubr.bf16.mxu0 %v1184_v11 }
 0x1ee   :  { %1860 = vmatmul.mubr.bf16.gmra.mxu0 %v1185_v10  ;;  %v1070_v14 = vadd.f32 %v2377_v31, %v1069_v12  ;;  %v1162_v21 = vmax.f32 %v1078_v16, 0.0 }
 0x1ef   :  { %v1818_v46 = vpop.f32.mrf.mxu1 }
 0x1f0   :  { %v1081_v15 = vadd.f32 %v1818_v46, %v2377_v31  ;;  %v1160_v19 = vmax.f32 %v1070_v14, 0.0 }
 0x1f1   :  { %v1072_v63 = vpop.f32.mrf.mxu1 }
 0x1f2   :  { %v1073_v17 = vadd.f32 %v2377_v31, %v1072_v63  ;;  %v1163_v18 = vmax.f32 %v1081_v15, 0.0 }
 0x1f4   :  { %v1161_v20 = vmax.f32 %v1073_v17, 0.0  ;;  %v1187_v23 = vpack.c.bf16 %v1163_v18, %v1162_v21  ;;  %v2414_v17 = vld [vmem:[%s2550_s6] ss:$0 sm:$0xff] }
 0x1f6   :  { %v1186_v22 = vpack.c.bf16 %v1161_v20, %v1160_v19 }
 0x1f8   :  { %1863 = vmatprep.mubr.bf16.mxu0 %v1186_v22 }
 0x1f9   :  { %1864 = vmatmul.mubr.bf16.gmra.mxu0 %v1187_v23 }
 0x1fb   :  { %v1821_v25 = vpop.f32.mrf.mxu1 }
 0x1fc   :  { %v1094_v29 = vadd.f32 %v1821_v25, %v2377_v31 }
 0x1fd   :  { %v1085_v26 = vpop.f32.mrf.mxu1 }
 0x1fe   :  { %v1086_v27 = vadd.f32 %v2377_v31, %v1085_v26  ;;  %v1166_v34 = vmax.f32 %v1094_v29, 0.0 }
 0x1ff   :  { %v1822_v51 = vpop.f32.mrf.mxu1 }
 0x200   :  { %v1097_v28 = vadd.f32 %v1822_v51, %v2377_v31  ;;  %v1164_v32 = vmax.f32 %v1086_v27, 0.0 }
 0x201   :  { %v1088_v2 = vpop.f32.mrf.mxu1 }
 0x202   :  { %v1089_v7 = vadd.f32 %v2377_v31, %v1088_v2  ;;  %v1167_v13 = vmax.f32 %v1097_v28, 0.0 }
 0x204   :  { %v1165_v33 = vmax.f32 %v1089_v7, 0.0  ;;  %v1189_v37 = vpack.c.bf16 %v1167_v13, %v1166_v34 }
 0x206   :  { %v1188_v35 = vpack.c.bf16 %v1165_v33, %v1164_v32 }
 0x208   :  { %1867 = vmatprep.mubr.bf16.mxu0 %v1188_v35 }
 0x209   :  { %1868 = vmatmul.mubr.bf16.gmra.mxu0 %v1189_v37 }
 0x20b   :  { %v1825_v38 = vpop.f32.mrf.mxu1 }
 0x20c   :  { %v1110_v43 = vadd.f32 %v1825_v38, %v2377_v31 }
 0x20d   :  { %v1101_v39 = vpop.f32.mrf.mxu1 }
 0x20e   :  { %v1102_v36 = vadd.f32 %v2377_v31, %v1101_v39  ;;  %v1170_v50 = vmax.f32 %v1110_v43, 0.0 }
 0x20f   :  { %v1826_v40 = vpop.f32.mrf.mxu1 }
 0x210   :  { %v1113_v42 = vadd.f32 %v1826_v40, %v2377_v31  ;;  %v1168_v48 = vmax.f32 %v1102_v36, 0.0 }
 0x211   :  { %v1104_v44 = vpop.f32.mrf.mxu1 }
 0x212   :  { %v1105_v24 = vadd.f32 %v2377_v31, %v1104_v44  ;;  %v1171_v45 = vmax.f32 %v1113_v42, 0.0 }
 0x213   :  { %v1829_v47 = vpop.f32.mrf.mxu1 }
 0x214   :  { %v1169_v49 = vmax.f32 %v1105_v24, 0.0  ;;  %v1191_v53 = vpack.c.bf16 %v1171_v45, %v1170_v50  ;;  %v1126_v30 = vadd.f32 %v1829_v47, %v2377_v31 }
 0x215   :  { %v1117_v41 = vpop.f32.mrf.mxu1 }
 0x216   :  { %v1190_v52 = vpack.c.bf16 %v1169_v49, %v1168_v48  ;;  %v1118_v55 = vadd.f32 %v2377_v31, %v1117_v41  ;;  %v1174_v3 = vmax.f32 %v1126_v30, 0.0 }
 0x217   :  { %v1830_v54 = vpop.f32.mrf.mxu1 }
 0x218   :  { %v1129_v57 = vadd.f32 %v1830_v54, %v2377_v31  ;;  %1871 = vmatprep.mubr.bf16.mxu0 %v1190_v52  ;;  %v1172_v62 = vmax.f32 %v1118_v55, 0.0 }
 0x219   :  { %v1120_v58 = vpop.f32.mrf.mxu1  ;;  %1872 = vmatmul.mubr.bf16.gmra.mxu0 %v1191_v53 }
 0x21a   :  { %v1121_v59 = vadd.f32 %v2377_v31, %v1120_v58  ;;  %v1175_v60 = vmax.f32 %v1129_v57, 0.0 }
 0x21b   :  { %v1833_v61 = vpop.f32.mrf.mxu1 }
 0x21c   :  { %v1173_v0 = vmax.f32 %v1121_v59, 0.0  ;;  %v1193_v6 = vpack.c.bf16 %v1175_v60, %v1174_v3  ;;  %v1142_v11 = vadd.f32 %v1833_v61, %v2377_v31 }
 0x21d   :  { %v1133_v56 = vpop.f32.mrf.mxu1 }
 0x21e   :  { %v1192_v4 = vpack.c.bf16 %v1173_v0, %v1172_v62  ;;  %v1134_v5 = vadd.f32 %v2377_v31, %v1133_v56  ;;  %v1178_v15 = vmax.f32 %v1142_v11, 0.0 }
 0x21f   :  { %v1834_v1 = vpop.f32.mrf.mxu1 }
 0x220   :  { %v1145_v8 = vadd.f32 %v1834_v1, %v2377_v31  ;;  %1875 = vmatprep.mubr.bf16.mxu0 %v1192_v4  ;;  %v1176_v46 = vmax.f32 %v1134_v5, 0.0 }
 0x221   :  { %v1136_v9 = vpop.f32.mrf.mxu1  ;;  %1876 = vmatmul.mubr.bf16.gmra.mxu0 %v1193_v6 }
 0x222   :  { %v1137_v10 = vadd.f32 %v2377_v31, %v1136_v9  ;;  %v1179_v12 = vmax.f32 %v1145_v8, 0.0 }
 0x224   :  { %v1177_v14 = vmax.f32 %v1137_v10, 0.0  ;;  %v1195_v63 = vpack.c.bf16 %v1179_v12, %v1178_v15 }
 0x226   :  { %v1194_v16 = vpack.c.bf16 %v1177_v14, %v1176_v46 }
 0x228   :  { %1879 = vmatprep.mubr.bf16.mxu0 %v1194_v16 }
 0x229   :  { %1880 = vmatmul.mubr.bf16.gmra.mxu0 %v1195_v63 }
 0x29e   :  { %v1853_v18 = vpop.f32.mrf.mxu0 }
 0x29f   :  { %v1310_v19 = vadd.f32 %v1853_v18, %v2414_v17 }
 0x2a0   :  { %v1301_v20 = vpop.f32.mrf.mxu0 }
 0x2a1   :  { %1430 = vst [vmem:[%s2551_s7 + $0x10] sm:$0xff] %v1310_v19  ;;  %v1302_v31 = vadd.f32 %v2414_v17, %v1301_v20 }
 0x2a2   :  { %v1854_v21 = vpop.f32.mrf.mxu0 }
 0x2a3   :  { %1428 = vst [vmem:[%s2551_s7] sm:$0xff] %v1302_v31  ;;  %v1313_v22 = vadd.f32 %v1854_v21, %v2414_v17 }
 0x2a4   :  { %v1304_v23 = vpop.f32.mrf.mxu0 }
 0x2a5   :  { %1431 = vst [vmem:[%s2551_s7 + $0x18] sm:$0xff] %v1313_v22  ;;  %v1305_v25 = vadd.f32 %v2414_v17, %v1304_v23 }
 0x2a6   :  { %v1857_v26 = vpop.f32.mrf.mxu0 }
 0x2a7   :  { %1429 = vst [vmem:[%s2551_s7 + $0x8] sm:$0xff] %v1305_v25  ;;  %v1326_v51 = vadd.f32 %v1857_v26, %v2414_v17 }
 0x2a8   :  { %v1317_v27 = vpop.f32.mrf.mxu0 }
 0x2a9   :  { %1434 = vst [vmem:[%s2551_s7 + $0x30] sm:$0xff] %v1326_v51  ;;  %v1318_v28 = vadd.f32 %v2414_v17, %v1317_v27 }
 0x2aa   :  { %v1858_v29 = vpop.f32.mrf.mxu0 }
 0x2ab   :  { %1432 = vst [vmem:[%s2551_s7 + $0x20] sm:$0xff] %v1318_v28  ;;  %v1329_v2 = vadd.f32 %v1858_v29, %v2414_v17 }
 0x2ac   :  { %v1320_v7 = vpop.f32.mrf.mxu0 }
 0x2ad   :  { %1435 = vst [vmem:[%s2551_s7 + $0x38] sm:$0xff] %v1329_v2  ;;  %v1321_v13 = vadd.f32 %v2414_v17, %v1320_v7 }
 0x2ae   :  { %v1861_v32 = vpop.f32.mrf.mxu0 }
 0x2af   :  { %1433 = vst [vmem:[%s2551_s7 + $0x28] sm:$0xff] %v1321_v13  ;;  %v1342_v33 = vadd.f32 %v1861_v32, %v2414_v17 }
 0x2b0   :  { %v1333_v34 = vpop.f32.mrf.mxu0 }
 0x2b1   :  { %1438 = vst [vmem:[%s2551_s7 + $0x50] sm:$0xff] %v1342_v33  ;;  %v1334_v35 = vadd.f32 %v2414_v17, %v1333_v34 }
 0x2b2   :  { %v1862_v37 = vpop.f32.mrf.mxu0 }
 0x2b3   :  { %1436 = vst [vmem:[%s2551_s7 + $0x40] sm:$0xff] %v1334_v35  ;;  %v1345_v38 = vadd.f32 %v1862_v37, %v2414_v17 }
 0x2b4   :  { %v1336_v39 = vpop.f32.mrf.mxu0 }
 0x2b5   :  { %1439 = vst [vmem:[%s2551_s7 + $0x58] sm:$0xff] %v1345_v38  ;;  %v1337_v40 = vadd.f32 %v2414_v17, %v1336_v39 }
 0x2b7   :  { %1437 = vst [vmem:[%s2551_s7 + $0x48] sm:$0xff] %v1337_v40 }
 0x2b9   :  { %v1865_v36 = vpop.f32.mrf.mxu0 }
 0x2ba   :  { %v1358_v42 = vadd.f32 %v1865_v36, %v2414_v17 }
 0x2bb   :  { %v1349_v43 = vpop.f32.mrf.mxu0 }
 0x2bc   :  { %1442 = vst [vmem:[%s2551_s7 + $0x70] sm:$0xff] %v1358_v42  ;;  %v1350_v44 = vadd.f32 %v2414_v17, %v1349_v43 }
 0x2bd   :  { %v1866_v24 = vpop.f32.mrf.mxu0 }
 0x2be   :  { %1440 = vst [vmem:[%s2551_s7 + $0x60] sm:$0xff] %v1350_v44  ;;  %v1361_v45 = vadd.f32 %v1866_v24, %v2414_v17 }
 0x2bf   :  { %v1352_v47 = vpop.f32.mrf.mxu0 }
 0x2c0   :  { %1443 = vst [vmem:[%s2551_s7 + $0x78] sm:$0xff] %v1361_v45  ;;  %v1353_v48 = vadd.f32 %v2414_v17, %v1352_v47 }
 0x2c2   :  { %1441 = vst [vmem:[%s2551_s7 + $0x68] sm:$0xff] %v1353_v48 }
 0x2c9   :  { %v1869_v49 = vpop.f32.mrf.mxu0 }
 0x2ca   :  { %v1374_v50 = vadd.f32 %v1869_v49, %v2414_v17 }
 0x2cb   :  { %v1365_v41 = vpop.f32.mrf.mxu0 }
 0x2cc   :  { %1446 = vst [vmem:[%s2551_s7 + $0x90] sm:$0xff] %v1374_v50  ;;  %v1366_v52 = vadd.f32 %v2414_v17, %v1365_v41 }
 0x2cd   :  { %v1870_v53 = vpop.f32.mrf.mxu0 }
 0x2ce   :  { %1444 = vst [vmem:[%s2551_s7 + $0x80] sm:$0xff] %v1366_v52  ;;  %v1377_v54 = vadd.f32 %v1870_v53, %v2414_v17 }
 0x2cf   :  { %v1368_v55 = vpop.f32.mrf.mxu0 }
 0x2d0   :  { %1447 = vst [vmem:[%s2551_s7 + $0x98] sm:$0xff] %v1377_v54  ;;  %v1369_v57 = vadd.f32 %v2414_v17, %v1368_v55 }
 0x2d2   :  { %1445 = vst [vmem:[%s2551_s7 + $0x88] sm:$0xff] %v1369_v57 }
 0x2d9   :  { %v1873_v30 = vpop.f32.mrf.mxu0 }
 0x2da   :  { %v1390_v58 = vadd.f32 %v1873_v30, %v2414_v17 }
 0x2db   :  { %v1381_v59 = vpop.f32.mrf.mxu0 }
 0x2dc   :  { %1450 = vst [vmem:[%s2551_s7 + $0xb0] sm:$0xff] %v1390_v58  ;;  %v1382_v60 = vadd.f32 %v2414_v17, %v1381_v59 }
 0x2dd   :  { %v1874_v61 = vpop.f32.mrf.mxu0 }
 0x2de   :  { %1448 = vst [vmem:[%s2551_s7 + $0xa0] sm:$0xff] %v1382_v60  ;;  %v1393_v62 = vadd.f32 %v1874_v61, %v2414_v17 }
 0x2df   :  { %v1384_v0 = vpop.f32.mrf.mxu0 }
 0x2e0   :  { %1451 = vst [vmem:[%s2551_s7 + $0xb8] sm:$0xff] %v1393_v62  ;;  %v1385_v3 = vadd.f32 %v2414_v17, %v1384_v0 }
 0x2e1   :  { %v1877_v56 = vpop.f32.mrf.mxu0 }
 0x2e2   :  { %1449 = vst [vmem:[%s2551_s7 + $0xa8] sm:$0xff] %v1385_v3  ;;  %v1406_v4 = vadd.f32 %v1877_v56, %v2414_v17 }
 0x2e3   :  { %v1397_v6 = vpop.f32.mrf.mxu0 }
 0x2e4   :  { %1454 = vst [vmem:[%s2551_s7 + $0xd0] sm:$0xff] %v1406_v4  ;;  %v1398_v1 = vadd.f32 %v2414_v17, %v1397_v6 }
 0x2e5   :  { %v1878_v5 = vpop.f32.mrf.mxu0 }
 0x2e6   :  { %1452 = vst [vmem:[%s2551_s7 + $0xc0] sm:$0xff] %v1398_v1  ;;  %v1409_v8 = vadd.f32 %v1878_v5, %v2414_v17 }
 0x2e7   :  { %v1400_v11 = vpop.f32.mrf.mxu0 }
 0x2e8   :  { %1455 = vst [vmem:[%s2551_s7 + $0xd8] sm:$0xff] %v1409_v8  ;;  %v1401_v9 = vadd.f32 %v2414_v17, %v1400_v11 }
 0x2e9   :  { %v1881_v10 = vpop.f32.mrf.mxu0 }
 0x2ea   :  { %1453 = vst [vmem:[%s2551_s7 + $0xc8] sm:$0xff] %v1401_v9  ;;  %v1422_v12 = vadd.f32 %v1881_v10, %v2414_v17 }
 0x2eb   :  { %v1413_v46 = vpop.f32.mrf.mxu0 }
 0x2ec   :  { %1458 = vst [vmem:[%s2551_s7 + $0xf0] sm:$0xff] %v1422_v12  ;;  %v1414_v14 = vadd.f32 %v2414_v17, %v1413_v46 }
 0x2ed   :  { %v1882_v15 = vpop.f32.mrf.mxu0 }
 0x2ee   :  { %1456 = vst [vmem:[%s2551_s7 + $0xe0] sm:$0xff] %v1414_v14  ;;  %v1425_v16 = vadd.f32 %v1882_v15, %v2414_v17 }
 0x2ef   :  { %v1416_v63 = vpop.f32.mrf.mxu0 }
 0x2f0   :  { %1459 = vst [vmem:[%s2551_s7 + $0xf8] sm:$0xff] %v1425_v16  ;;  %v1417_v18 = vadd.f32 %v2414_v17, %v1416_v63 }
 0x2f2   :  { %1457 = vst [vmem:[%s2551_s7 + $0xe8] sm:$0xff] %v1417_v18 }

</bundles_post_ra>
